<compile_context>
chip_gen: v7x
topology: tpu7x:2x2x1
jax: 0.10.0
libtpu: 0.0.40
codegen_flags: <defaults>
</compile_context>

<pallas_src>
from typing import NamedTuple

import jax
import jax.numpy as jnp
from jax.experimental import pallas as pl
from jax.experimental.pallas import tpu as pltpu


def _round_up(x, m):
    return (x + m - 1) // m * m


def _cdiv(a, b):
    return -(-a // b)


def _vmem_capacity_bytes(default=64 << 20):
    """Physical VMEM per TensorCore; conservative default (v7x) if unknown."""
    try:
        v = int(pltpu.get_tpu_info().vmem_capacity_bytes)
        if v > 0:
            return v
    except Exception:
        pass
    return default


def _tensorcores_per_chip(default=1):
    """TensorCores sharing the grid (v7x: 2). Default 1 => no even-step
    rounding, which is the right (no-waste) behavior on v5e/v6e anyway."""
    try:
        info = pltpu.get_tpu_info()
        for name in ("num_tensorcores", "tensorcores_per_chip", "num_cores",
                     "cores_per_chip", "core_count"):
            v = getattr(info, name, None)
            if isinstance(v, int) and v > 0:
                return int(v)
    except Exception:
        pass
    try:
        v = getattr(jax.devices()[0], "num_cores", None)
        if isinstance(v, int) and v > 0:
            return int(v)
    except Exception:
        pass
    return default


class QNetParams(NamedTuple):
    w1: jax.Array   # [in_dim, hid_pad]   bf16
    b1: jax.Array   # [1, hid_pad]        f32
    w2: jax.Array   # [hid_pad, out_dim]  bf16
    b2: jax.Array   # [1, out_dim]        f32


def prepare_qnet_params(w1, b1, w2, b2):
    """One-time prep (model init, NOT per forward call): cast weights to bf16,
    biases to f32 [1, d], and zero-pad the hidden dim to a multiple of 128.
    Padded hidden units see b1=0 -> tanh(0)=0 and multiply zero W2 rows, so
    the padding is exact."""
    in_dim, hidden = w1.shape
    hid_pad = _round_up(hidden, 128)
    w1p = jnp.pad(w1.astype(jnp.bfloat16), ((0, 0), (0, hid_pad - hidden)))
    w2p = jnp.pad(w2.astype(jnp.bfloat16), ((0, hid_pad - hidden), (0, 0)))
    b1p = jnp.pad(b1.reshape(1, -1).astype(jnp.float32),
                  ((0, 0), (0, hid_pad - hidden)))
    b2p = b2.reshape(1, -1).astype(jnp.float32)
    return QNetParams(w1p, b1p, w2p, b2p)


def qnet_kernel(x_ref, w1_ref, b1_ref, w2_ref, b2_ref, mask_ref, o_ref):
    # Layer 1: bf16 MXU matmul with f32 accumulation; bias + tanh in f32.
    x = x_ref[...].astype(jnp.bfloat16)               # in-kernel cast (hides under DMA)
    h = jnp.dot(x, w1_ref[...], preferred_element_type=jnp.float32)
    h = jnp.tanh(h + b1_ref[...])                     # b1 (1, hid) broadcasts over rows
    # Layer 2: cast hidden back to bf16 for the MXU, keep f32 accumulation.
    y = jnp.dot(h.astype(jnp.bfloat16), w2_ref[...],
                preferred_element_type=jnp.float32)
    y = y + b2_ref[...]                                # b2 (1, out) broadcasts
    # Mask multiply in f32 (exact for arbitrary, not just 0/1, masks).
    o_ref[...] = (y * mask_ref[...].astype(jnp.float32)).astype(o_ref.dtype)


def q_net_forward(x, mask, params, *, bm=2048):
    """x: [B, in_dim] (f32/bf16), mask: [B, out_dim] (f32/bf16/int),
    params: QNetParams from prepare_qnet_params.
    Returns float32 [B, out_dim] = (tanh(x @ w1 + b1) @ w2 + b2) * mask."""
    B, in_dim = x.shape
    hid_pad = params.w1.shape[1]
    out_dim = params.w2.shape[1]
    assert params.w1.shape[0] == in_dim
    assert mask.shape == (B, out_dim)

    # --- Streamed bytes per batch row and resident weight bytes ---------------
    row_bytes = (in_dim * x.dtype.itemsize            # x tile
                 + out_dim * mask.dtype.itemsize      # mask tile
                 + out_dim * 4)                       # f32 out tile
    resident = 2 * sum(a.size * a.dtype.itemsize for a in params)  # 2 bufs each
    headroom = 2 << 20

    # --- VMEM budget: 2x streamed tiles + 2x resident weights, per-gen cap ----
    vmem_cap = min(_vmem_capacity_bytes() * 3 // 4, 100 << 20)
    max_rows = max(256, (vmem_cap - resident - headroom) // (2 * row_bytes))
    bm = max(256, (min(bm, max_rows) // 256) * 256)   # multiple of 256

    if B <= bm:
        # Latency-bound path: one grid step, full-array blocks, zero copies.
        # TODO(synk): below ~256 rows plain XLA fuses this 2-layer MLP fine and
        # would avoid kernel-launch overhead entirely.
        bm_eff, steps = B, 1
        x_p, mask_p = x, mask
    else:
        # Pick step count first (rounded to an even multiple of the TC count on
        # multi-TensorCore chips), then the tile -> bounded padding waste.
        tc = _tensorcores_per_chip()
        steps = _cdiv(B, bm)
        if tc > 1 and steps % tc:
            steps += tc - steps % tc
        bm_eff = min(bm, _round_up(_cdiv(B, steps), 256))
        b_pad = steps * bm_eff
        if b_pad == B:
            x_p, mask_p = x, mask                     # aligned batch: zero copies
        else:
            pad = b_pad - B                           # only when B doesn't divide
            x_p = jnp.pad(x, ((0, pad), (0, 0)))
            mask_p = jnp.pad(mask, ((0, pad), (0, 0)))

    streamed = 2 * bm_eff * row_bytes                 # double-buffered tiles
    vmem_limit = int(min(max(streamed + resident + headroom, 8 << 20), vmem_cap))

    out = pl.pallas_call(
        qnet_kernel,
        out_shape=jax.ShapeDtypeStruct((steps * bm_eff, out_dim), jnp.float32),
        grid=(steps,),
        in_specs=[
            pl.BlockSpec((bm_eff, in_dim), lambda i: (i, 0)),    # x     (streamed)
            pl.BlockSpec((in_dim, hid_pad), lambda i: (0, 0)),   # W1    (resident)
            pl.BlockSpec((1, hid_pad), lambda i: (0, 0)),        # b1    (resident)
            pl.BlockSpec((hid_pad, out_dim), lambda i: (0, 0)),  # W2    (resident)
            pl.BlockSpec((1, out_dim), lambda i: (0, 0)),        # b2    (resident)
            pl.BlockSpec((bm_eff, out_dim), lambda i: (i, 0)),   # mask  (streamed)
        ],
        out_specs=pl.BlockSpec((bm_eff, out_dim), lambda i: (i, 0)),
        compiler_params=pltpu.CompilerParams(
            dimension_semantics=("parallel",),
            vmem_limit_bytes=vmem_limit,
        ),
    )(x_p, params.w1, params.b1, params.w2, params.b2, mask_p)

    return out if steps * bm_eff == B else out[:B]


def reference_forward(x, w1, b1, w2, b2, mask):
    return (jnp.tanh(x @ w1 + b1) @ w2 + b2) * mask


if __name__ == "__main__":
    # Small shapes consistent with Q_Net(in_dim, hidden_dim, out_dim).
    B, in_dim, hidden_dim, out_dim = 8, 16, 32, 8

    key = jax.random.PRNGKey(0)
    kx, kw1, kb1, kw2, kb2, km, kx2, km2 = jax.random.split(key, 8)

    x = jax.random.normal(kx, (B, in_dim), dtype=jnp.float32)
    w1 = jax.random.normal(kw1, (in_dim, hidden_dim), dtype=jnp.float32) * 0.1
    b1 = jax.random.normal(kb1, (hidden_dim,), dtype=jnp.float32) * 0.1
    w2 = jax.random.normal(kw2, (hidden_dim, out_dim), dtype=jnp.float32) * 0.1
    b2 = jax.random.normal(kb2, (out_dim,), dtype=jnp.float32) * 0.1
    mask = (jax.random.uniform(km, (B, out_dim)) > 0.3).astype(jnp.float32)

    params = prepare_qnet_params(w1, b1, w2, b2)   # one-time prep

    # Small-batch (single-step, latency) path.
    out = q_net_forward(x, mask, params)
    out = jax.block_until_ready(out)
    ref = reference_forward(x, w1, b1, w2, b2, mask)
    assert out.shape == (B, out_dim)
    # bf16 weights with f32 accumulation -> relaxed tolerance vs f32 reference.
    assert jnp.allclose(out, ref, atol=2e-2, rtol=2e-2), "small-batch mismatch"

    # Multi-step (streamed tiles) path, forced with a tiny bm; still small data.
    B2 = 600
    x2 = jax.random.normal(kx2, (B2, in_dim), dtype=jnp.float32)
    mask2 = (jax.random.uniform(km2, (B2, out_dim)) > 0.3).astype(jnp.float32)
    out2 = jax.block_until_ready(q_net_forward(x2, mask2, params, bm=256))
    ref2 = reference_forward(x2, w1, b1, w2, b2, mask2)
    assert out2.shape == (B2, out_dim)
    assert jnp.allclose(out2, ref2, atol=2e-2, rtol=2e-2), "multi-step mismatch"

    print("KERNEL_OK")
</pallas_src>

<mosaic_0001>
module attributes {stable_mosaic.version = 11 : i64} {
  func.func @qnet_kernel(%arg0: i32, %arg1: memref<8x16xf32, #tpu.memory_space<vmem>>, %arg2: memref<16x128xbf16, #tpu.memory_space<vmem>>, %arg3: memref<1x128xf32, #tpu.memory_space<vmem>>, %arg4: memref<128x8xbf16, #tpu.memory_space<vmem>>, %arg5: memref<1x8xf32, #tpu.memory_space<vmem>>, %arg6: memref<8x8xf32, #tpu.memory_space<vmem>>, %arg7: memref<8x8xf32, #tpu.memory_space<vmem>>) attributes {dimension_semantics = [#tpu.dimension_semantics<parallel>], iteration_bounds = array<i64: 1>, scalar_prefetch = 0 : i64, scratch_operands = 0 : i64, tpu.core_type = #tpu.core_type<tc>, window_params = [{transform_indices = @transform_0, window_bounds = array<i64: 8, 16>}, {pipeline_mode = #tpu.pipeline_mode<synchronous>, transform_indices = @transform_1, window_bounds = array<i64: 16, 128>}, {pipeline_mode = #tpu.pipeline_mode<synchronous>, transform_indices = @transform_2, window_bounds = array<i64: 1, 128>}, {pipeline_mode = #tpu.pipeline_mode<synchronous>, transform_indices = @transform_3, window_bounds = array<i64: 128, 8>}, {pipeline_mode = #tpu.pipeline_mode<synchronous>, transform_indices = @transform_4, window_bounds = array<i64: 1, 8>}, {transform_indices = @transform_5, window_bounds = array<i64: 8, 8>}, {transform_indices = @transform_6, window_bounds = array<i64: 8, 8>}]} {
    %c0 = arith.constant 0 : index
    %c0_0 = arith.constant 0 : index
    %0 = vector.load %arg1[%c0, %c0_0] : memref<8x16xf32, #tpu.memory_space<vmem>>, vector<8x16xf32>
    %1 = arith.truncf %0 : vector<8x16xf32> to vector<8x16xbf16>
    %c0_1 = arith.constant 0 : index
    %c0_2 = arith.constant 0 : index
    %2 = vector.load %arg2[%c0_1, %c0_2] : memref<16x128xbf16, #tpu.memory_space<vmem>>, vector<16x128xbf16>
    %cst = arith.constant dense<0.000000e+00> : vector<8x128xf32>
    %3 = tpu.matmul %1, %2, %cst {dimension_numbers = #tpu.dot_dimension_numbers<[1], [0], [0], [1], [0, 0, 1, 1], [], []>} : vector<8x16xbf16>, vector<16x128xbf16>, vector<8x128xf32> -> vector<8x128xf32>
    %c0_3 = arith.constant 0 : index
    %c0_4 = arith.constant 0 : index
    %4 = vector.load %arg3[%c0_3, %c0_4] : memref<1x128xf32, #tpu.memory_space<vmem>>, vector<1x128xf32>
    %5 = vector.broadcast %4 : vector<1x128xf32> to vector<8x128xf32>
    %6 = arith.addf %3, %5 : vector<8x128xf32>
    %7 = math.tanh %6 : vector<8x128xf32>
    %8 = arith.truncf %7 : vector<8x128xf32> to vector<8x128xbf16>
    %c0_5 = arith.constant 0 : index
    %c0_6 = arith.constant 0 : index
    %9 = vector.load %arg4[%c0_5, %c0_6] : memref<128x8xbf16, #tpu.memory_space<vmem>>, vector<128x8xbf16>
    %cst_7 = arith.constant dense<0.000000e+00> : vector<8x8xf32>
    %10 = tpu.matmul %8, %9, %cst_7 {dimension_numbers = #tpu.dot_dimension_numbers<[1], [0], [0], [1], [0, 0, 1, 1], [], []>} : vector<8x128xbf16>, vector<128x8xbf16>, vector<8x8xf32> -> vector<8x8xf32>
    %c0_8 = arith.constant 0 : index
    %c0_9 = arith.constant 0 : index
    %11 = vector.load %arg5[%c0_8, %c0_9] : memref<1x8xf32, #tpu.memory_space<vmem>>, vector<1x8xf32>
    %12 = vector.broadcast %11 : vector<1x8xf32> to vector<8x8xf32>
    %13 = arith.addf %10, %12 : vector<8x8xf32>
    %c0_10 = arith.constant 0 : index
    %c0_11 = arith.constant 0 : index
    %14 = vector.load %arg6[%c0_10, %c0_11] : memref<8x8xf32, #tpu.memory_space<vmem>>, vector<8x8xf32>
    %15 = arith.mulf %13, %14 : vector<8x8xf32>
    %c0_12 = arith.constant 0 : index
    %c0_13 = arith.constant 0 : index
    %16 = vector.load %arg7[%c0_12, %c0_13] : memref<8x8xf32, #tpu.memory_space<vmem>>, vector<8x8xf32>
    tpu.vector_store %arg7[%c0_12, %c0_13], %15 {strides = array<i32>} : memref<8x8xf32, #tpu.memory_space<vmem>>, vector<8x8xf32>,
    return
  }
  func.func @transform_0(%arg0: i32) -> (i32, i32) {
    %c0_i32 = arith.constant 0 : i32
    %c0_i32_0 = arith.constant 0 : i32
    return %arg0, %c0_i32 : i32, i32
  }
  func.func @transform_1(%arg0: i32) -> (i32, i32) {
    %c0_i32 = arith.constant 0 : i32
    %c0_i32_0 = arith.constant 0 : i32
    %c0_i32_1 = arith.constant 0 : i32
    return %c0_i32, %c0_i32_0 : i32, i32
  }
  func.func @transform_2(%arg0: i32) -> (i32, i32) {
    %c0_i32 = arith.constant 0 : i32
    %c0_i32_0 = arith.constant 0 : i32
    %c0_i32_1 = arith.constant 0 : i32
    return %c0_i32, %c0_i32_0 : i32, i32
  }
  func.func @transform_3(%arg0: i32) -> (i32, i32) {
    %c0_i32 = arith.constant 0 : i32
    %c0_i32_0 = arith.constant 0 : i32
    %c0_i32_1 = arith.constant 0 : i32
    return %c0_i32, %c0_i32_0 : i32, i32
  }
  func.func @transform_4(%arg0: i32) -> (i32, i32) {
    %c0_i32 = arith.constant 0 : i32
    %c0_i32_0 = arith.constant 0 : i32
    %c0_i32_1 = arith.constant 0 : i32
    return %c0_i32, %c0_i32_0 : i32, i32
  }
  func.func @transform_5(%arg0: i32) -> (i32, i32) {
    %c0_i32 = arith.constant 0 : i32
    %c0_i32_0 = arith.constant 0 : i32
    return %arg0, %c0_i32 : i32, i32
  }
  func.func @transform_6(%arg0: i32) -> (i32, i32) {
    %c0_i32 = arith.constant 0 : i32
    %c0_i32_0 = arith.constant 0 : i32
    return %arg0, %c0_i32 : i32, i32
  }
}

</mosaic_0001>

<bundles_post_ra>
// kernel: tpu_custom_call.1
= control target key start
LH: loop header
LB: loop body
LE: loop exit
PB: predicated region body
PF: predicated region fallthrough
CT: control target
= control target key end

     0   :  { %v304_v1 = vmov 0.0   ;;  %vm42_vm0 = vcmask 130048   ;;  %vm305_vm1 = vmmov 0   ;;  %s393_s0 = inlined_call_operand.vmem [shape: f32[8,16], index: 0, kind: input, shape index: {}]   ;;  %s394_s1 = inlined_call_operand.vmem [shape: bf16[16,128], index: 1, kind: input, shape index: {}]   ;;  %s395_s2 = inlined_call_operand.vmem [shape: f32[1,128], index: 2, kind: input, shape index: {}]   ;;  %s396_s3 = inlined_call_operand.vmem [shape: bf16[128,8], index: 3, kind: input, shape index: {}]   ;;  %s397_s4 = inlined_call_operand.vmem [shape: f32[1,8], index: 4, kind: input, shape index: {}]   ;;  %s398_s5 = inlined_call_operand.vmem [shape: f32[8,8], index: 5, kind: input, shape index: {}]   ;;  %s399_s6 = inlined_call_operand.hbm [shape: f32[8,8], index: 6, kind: output, shape index: {}]  }
   0x1   :  { %v269_v0 = vld [vmem:[%s394_s1] sm:$0xff]   ;;  %240 = vmatprep.subr.bf16.mxu0 %v304_v1  ;;  %246 = vmatprep.subr.bf16.mxu1 %v304_v1  ;;  %v271_v5 = vld [vmem:[%s396_s3 + $0x8] sm:$0xff]   ;;  %v272_v6 = vld [vmem:[%s396_s3 + $0x10] sm:$0xff]  }
   0x2   :  { %v25_v2 = vld [vmem:[%s393_s0] sm:$0xff]  ;;  %241 = vmatpush3.bf16.msra.mxu0 %v269_v0  ;;  %242 = vmatprep.mubr.msk.bf16.mxu0 %vm305_vm1, %v304_v1 }
   0x3   :  { %v270_v3 = vld [vmem:[%s396_s3] sm:$0xff]   ;;  %v26_v4 = vpack.c.bf16 %v25_v2, %v25_v2  ;;  %262 = vmatprep.mubr.msk.bf16.mxu1 %vm305_vm1, %v304_v1 }
   0x4   :  { %247 = vmatpush3.bf16.msra.mxu1 %v270_v3 }
   0x5   :  { %248 = vmatprep.subr.bf16.mxu1 %v304_v1  ;;  %243 = vmatmul.mubr.msk.bf16.vlgmr.msra.gmra.mrb[0].mxu0 %vm42_vm0, %v26_v4 }
   0x8   :  { %249 = vmatpush3.bf16.msra.mxu1 %v271_v5 }
   0x9   :  { %250 = vmatprep.subr.bf16.mxu1 %v304_v1 }
   0xa   :  { %11 = vsyncpa [#allocation3], 0  ;;  %v273_v7 = vld [vmem:[%s396_s3 + $0x18] sm:$0xff]   ;;  %v274_v8 = vld [vmem:[%s396_s3 + $0x20] sm:$0xff]   ;;  %s306_s20 = smov [#allocation2]   ;;  %vm201_vm2 = vcmask 64512  }
   0xb   :  { %v275_v9 = vld [vmem:[%s396_s3 + $0x28] sm:$0xff]   ;;  %v276_v10 = vld [vmem:[%s396_s3 + $0x30] sm:$0xff]   ;;  %v277_v11 = vld [vmem:[%s396_s3 + $0x38] sm:$0xff]  }
   0xc   :  { %251 = vmatpush3.bf16.msra.mxu1 %v272_v6  ;;  %v217_v12 = vld [vmem:[%s395_s2] ss:$0 sm:$0xff]  ;;  %s209_s2 = sshll.u32 %s306_s20, 4  ;;  %s210_s2 = int_to_ptr.vmem [resolvable:$true] %s209_s2 }
   0xd   :  { %252 = vmatprep.subr.bf16.mxu1 %v304_v1  ;;  %v220_v20 = vld [vmem:[%s397_s4] ss:$0 sm:$0xff]  ;;  %s280_s21 = scalar_lea.vmem %s210_s2, 128  ;;  %p285_p1 = scmp.lt.s32.totalorder %s210_s2, %s210_s2 }
   0xe   :  { %v199_v22 = vld [vmem:[%s398_s5] sm:$0xff]  ;;  %p281_p0 = scmp.ne.s32.totalorder %s210_s2, %s280_s21  ;;  %p286_p2 = scmp.lt.s32.totalorder %s280_s21, %s280_s21 }
  0x10   :  { %253 = vmatpush3.bf16.msra.mxu1 %v273_v7  ;;  %p287_p3 = por %p286_p2, %p285_p1 }
  0x11   :  { %254 = vmatprep.subr.bf16.mxu1 %v304_v1 }
  0x12   :  { %p288_p4 = pnand %p287_p3, %p281_p0 }
  0x14   :  { %255 = vmatpush3.bf16.msra.mxu1 %v274_v8 }
  0x15   :  { %256 = vmatprep.subr.bf16.mxu1 %v304_v1 }
  0x18   :  { %257 = vmatpush3.bf16.msra.mxu1 %v275_v9 }
  0x19   :  { %258 = vmatprep.subr.bf16.mxu1 %v304_v1 }
  0x1c   :  { %259 = vmatpush3.bf16.msra.mxu1 %v276_v10 }
  0x1d   :  { %260 = vmatprep.subr.bf16.mxu1 %v304_v1 }
  0x20   :  { %261 = vmatpush3.bf16.msra.mxu1 %v277_v11 }
  0xd8   :  { %v80_v13 = vpop.f32.mrb[0].mxu0 }
  0xd9   :  { %v81_v14 = vadd.f32 %v217_v12, %v80_v13  ;;  %v244_v15 = vpop.f32.mrb[1].mxu0 }
  0xda   :  { %v83_v16 = vpop.f32.mrb[2].mxu0 }
  0xdb   :  { %278 = vtanh.f32 %v81_v14  ;;  %v245_v17 = vpop.f32.mrb[3].mxu0 }
  0xe5   :  { %v279_v18 = vpop.eup %278 }
  0xe6   :  { %v87_v19 = vpack.c.bf16 %v279_v18, %v279_v18 }
  0xe8   :  { %263 = vmatmul.mubr.bf16.vlgmr.msra.gmra.mrb[0].mxu1 %v87_v19 }
 0x1bb   :  { %v193_v21 = vpop.f32.mrb[0].mxu1 }
 0x1bc   :  { %v194_v23 = vadd.f32 %v220_v20, %v193_v21  ;;  %v264_v24 = vpop.f32.mrb[1].mxu1 }
 0x1bd   :  { %v196_v25 = vpop.f32.mrb[2].mxu1 }
 0x1be   :  { %v200_v26 = vmul.f32 %v199_v22, %v194_v23  ;;  %v265_v27 = vpop.f32.mrb[3].mxu1 }
 0x1c0   :  { %202 = vst.msk [vmem:[#allocation2] sm:$0xff] %vm201_vm2, %v200_v26 }
 0x1c1   :  { %291 = shalt.err (!%p288_p4)
}
 0x1c2   :  { %s292_s5 = scalar_lea.hbm %s399_s6, 128 }
 0x1c3   :  { %p293_p5 = scmp.ne.s32.totalorder %s399_s6, %s292_s5  ;;  %p296_p6 = scmp.lt.u32.totalorder %s292_s5, %s399_s6 }
 0x1c5   :  { %p298_p7 = pnand %p296_p6, %p293_p5 }
 0x1c7   :  { %301 = shalt.err (!%p298_p7)
}
 0x1c8   :  { %212 = dma.vmem_to_hbm [thread:$0]  %s210_s2, 128, %s399_s6, [#allocation3]  }
 0x1c9   :  { %302 = dma.done.wait [#allocation3], 128  }
 0x1ca   :  { %303 = vsyncadd [#allocation3], 4294967168 }
 0x1cb   :  { %216 = vsyncpa [#allocation3], 1 }

</bundles_post_ra>
